<compile_context>
chip_gen: v6e
topology: v6e:2x2x1
jax: 0.10.0
libtpu: 0.0.40
codegen_flags: <defaults>
</compile_context>

<pallas_src>
import jax
import jax.numpy as jnp
from jax.experimental import pallas as pl
from jax.experimental.pallas import tpu as pltpu

LN_EPS = 1e-5  # nn.LayerNorm default


def _round_up(x, m):
    return (x + m - 1) // m * m


def _vmem_capacity_bytes():
    """Physical VMEM per TensorCore; conservative fallback if unqueryable."""
    try:
        info = pltpu.get_tpu_info()
        cap = getattr(info, "vmem_capacity_bytes", None)
        if cap:
            return int(cap)
    except Exception:
        pass
    return 64 << 20  # v7x-sized fallback (safe lower bound for v5e/v6e too)


def _layernorm_f32(x_ref, gamma_ref, beta_ref, d_real, d_pad):
    """f32 LayerNorm over the real feature dim (padded lanes masked to 0)."""
    x = x_ref[...].astype(jnp.float32)
    need_mask = d_pad != d_real
    if need_mask:
        lane = jax.lax.broadcasted_iota(jnp.int32, x.shape, dimension=1)
        valid = lane < d_real
        x = jnp.where(valid, x, 0.0)
    inv_d = 1.0 / float(d_real)
    mean = jnp.sum(x, axis=-1, keepdims=True) * inv_d
    xc = x - mean
    if need_mask:
        xc = jnp.where(valid, xc, 0.0)
    var = jnp.sum(xc * xc, axis=-1, keepdims=True) * inv_d
    inv = jax.lax.rsqrt(var + LN_EPS)
    # Padded lanes of gamma/beta are zero -> y is zero there, so the (zero)
    # padded rows of W contribute nothing to the matmul.
    return (xc * inv * gamma_ref[...].astype(jnp.float32)
            + beta_ref[...].astype(jnp.float32))


def _make_fused_kernel(d_real, d_pad):
    """LN + Linear; LN recomputed every grid step (single-j or j-outer)."""
    def kernel(x_ref, gamma_ref, beta_ref, w_ref, b_ref, o_ref):
        y = _layernorm_f32(x_ref, gamma_ref, beta_ref, d_real, d_pad)
        # Cast activations to the weight dtype (bf16 fast path) before the
        # MXU matmul; accumulate in f32.
        acc = jnp.dot(y.astype(w_ref.dtype), w_ref[...],
                      preferred_element_type=jnp.float32)
        o_ref[...] = (acc + b_ref[...].astype(jnp.float32)).astype(o_ref.dtype)
    return kernel


def _make_ln_cached_kernel(d_real, d_pad):
    """LN computed once per row tile (j == 0), reused for every column tile."""
    def kernel(x_ref, gamma_ref, beta_ref, w_ref, b_ref, o_ref, y_scr):
        @pl.when(pl.program_id(1) == 0)
        def _():
            y = _layernorm_f32(x_ref, gamma_ref, beta_ref, d_real, d_pad)
            y_scr[...] = y.astype(y_scr.dtype)
        acc = jnp.dot(y_scr[...], w_ref[...],
                      preferred_element_type=jnp.float32)
        o_ref[...] = (acc + b_ref[...].astype(jnp.float32)).astype(o_ref.dtype)
    return kernel


def prenorm_linear_forward(x, gamma, beta, w_t, b, *,
                           row_tile=None, force_tile_n=None):
    """PreNorm forward with fn = Linear.

    x: (B, N, D); gamma/beta: (D,) LayerNorm affine params;
    w_t: (D_in, D_out) weight, input-major (transposed ONCE at prep time) and
         optionally pre-cast to bf16 for the fast MXU path;
    b: (D_out,).  Returns (B, N, D_out) in x.dtype.
    """
    B, N, D = x.shape
    d_in, d_out = w_t.shape
    assert d_in == D, "weight must be (D_in, D_out)"
    rows = B * N
    x_item = jnp.dtype(x.dtype).itemsize
    w_item = jnp.dtype(w_t.dtype).itemsize

    # Lane-dense feature padding only when the dims are not already aligned.
    d_pad = D if D % 128 == 0 else _round_up(max(D, 1), 128)
    n_pad = d_out if d_out % 128 == 0 else _round_up(max(d_out, 1), 128)

    # Generation-aware VMEM budget (~25% headroom left for Mosaic scratch).
    budget = (_vmem_capacity_bytes() * 3) // 4

    # Output-column tiling.  The W slab is double-buffered by the BlockSpec
    # pipeline, so budget 2x its bytes against (half of) the VMEM budget.
    # TODO(synk): pipeline_mode=pl.Buffered(1) on W/gamma/beta/bias would
    # reclaim the second W buffer (their block index rarely changes).
    if force_tile_n is not None:
        tile_n = force_tile_n
    elif 2 * d_pad * n_pad * w_item <= budget // 2:
        tile_n = n_pad                       # whole weight stays VMEM-resident
    else:
        tile_n = 512                         # multiple of 256 for v6e/v7x MXU
        while tile_n > 256 and 2 * d_pad * tile_n * w_item > budget // 2:
            tile_n //= 2
    n_pad = _round_up(n_pad, tile_n)
    nj = n_pad // tile_n

    def vmem_cost(tm_):
        cost = (2 * tm_ * d_pad * x_item        # x tile (double buffered)
                + 2 * tm_ * tile_n * x_item     # out tile (double buffered)
                + 2 * d_pad * tile_n * w_item   # W slab (double buffered)
                + 4 * (d_pad + tile_n) * 4)     # gamma / beta / bias
        if nj > 1:
            cost += tm_ * d_pad * w_item        # cached LN output scratch
        return cost

    # Row tile: scale with VMEM, shrink for huge d_pad, keep multiple of 8.
    desired = row_tile if row_tile is not None else (
        1024 if budget >= (64 << 20) else 512)
    desired = max(_round_up(desired, 8), 8)
    while desired > 8 and vmem_cost(desired) > budget:
        desired //= 2

    if rows % 8 == 0:
        # Largest multiple-of-8 divisor of rows that fits `desired` -> no pad.
        f = max(min(desired, rows) // 8, 1)
        while f > 1 and (rows // 8) % f != 0:
            f -= 1
        tm = 8 * f
        if tm == rows or tm >= min(desired, 256):
            rows_p = rows                       # aligned: no row pad / slice
        else:                                   # divisor too skinny -> pad
            tm = min(desired, _round_up(rows, 8))
            rows_p = _round_up(rows, tm)
    else:
        tm = min(desired, _round_up(rows, 8))
        rows_p = _round_up(rows, tm)
    ni = rows_p // tm

    # Pad only when needed; padded W rows/cols and gamma/beta are zero so the
    # padded lanes cannot poison the matmul.
    x2d = x.reshape(rows, D)
    if rows_p != rows or d_pad != D:
        x2d = jnp.pad(x2d, ((0, rows_p - rows), (0, d_pad - D)))
    gamma_p = (gamma if d_pad == D else jnp.pad(gamma, (0, d_pad - D)))
    beta_p = (beta if d_pad == D else jnp.pad(beta, (0, d_pad - D)))
    gamma_p = gamma_p.reshape(1, d_pad)
    beta_p = beta_p.reshape(1, d_pad)
    w_p = (w_t if (d_pad == D and n_pad == d_out)
           else jnp.pad(w_t, ((0, d_pad - D), (0, n_pad - d_out))))
    b_p = (b if n_pad == d_out else jnp.pad(b, (0, n_pad - d_out)))
    b_p = b_p.reshape(1, n_pad)

    # Grid order: i-outer re-streams W (ni-1) extra times but enables the LN
    # cache; j-outer re-streams x (nj-1) extra times.  Pick the cheaper one.
    w_bytes = d_pad * n_pad * w_item
    x_bytes = rows_p * d_pad * x_item
    i_outer = nj == 1 or (ni - 1) * w_bytes <= (nj - 1) * x_bytes

    scratch_shapes = []
    if i_outer:
        grid = (ni, nj)
        x_map = lambda i, j: (i, 0)
        p_map = lambda i, j: (0, 0)
        w_map = lambda i, j: (0, j)
        b_map = lambda i, j: (0, j)
        o_map = lambda i, j: (i, j)
        if nj > 1:
            kernel = _make_ln_cached_kernel(D, d_pad)
            scratch_shapes = [pltpu.VMEM((tm, d_pad), w_t.dtype)]
            dims = ("parallel", "arbitrary")    # j steps reuse the LN scratch
        else:
            kernel = _make_fused_kernel(D, d_pad)
            dims = ("parallel", "parallel")
    else:
        grid = (nj, ni)                         # W read once, x streamed per j
        x_map = lambda j, i: (i, 0)
        p_map = lambda j, i: (0, 0)
        w_map = lambda j, i: (0, j)
        b_map = lambda j, i: (0, j)
        o_map = lambda j, i: (i, j)
        kernel = _make_fused_kernel(D, d_pad)
        dims = ("parallel", "parallel")

    est = vmem_cost(tm)
    vmem_limit = int(min(budget, max(est + est // 2, 32 << 20)))

    out = pl.pallas_call(
        kernel,
        out_shape=jax.ShapeDtypeStruct((rows_p, n_pad), x.dtype),
        grid=grid,
        in_specs=[
            pl.BlockSpec((tm, d_pad), x_map),       # x row tile
            pl.BlockSpec((1, d_pad), p_map),        # gamma (resident)
            pl.BlockSpec((1, d_pad), p_map),        # beta  (resident)
            pl.BlockSpec((d_pad, tile_n), w_map),   # W (input-major)
            pl.BlockSpec((1, tile_n), b_map),       # bias
        ],
        out_specs=pl.BlockSpec((tm, tile_n), o_map),
        scratch_shapes=scratch_shapes,
        compiler_params=pltpu.CompilerParams(
            dimension_semantics=dims,
            vmem_limit_bytes=vmem_limit,
        ),
    )(x2d, gamma_p, beta_p, w_p, b_p)

    if rows_p != rows or n_pad != d_out:
        out = out[:rows, :d_out]
    return out.reshape(B, N, d_out)


def _reference(x, gamma, beta, w_t, b):
    """Plain-JAX PreNorm(LayerNorm -> Linear) reference (torch semantics)."""
    mean = jnp.mean(x, axis=-1, keepdims=True)
    var = jnp.mean((x - mean) ** 2, axis=-1, keepdims=True)
    y = (x - mean) / jnp.sqrt(var + LN_EPS) * gamma + beta
    return jnp.einsum("bnd,do->bno", y, w_t,
                      precision=jax.lax.Precision.HIGHEST) + b


if __name__ == "__main__":
    key = jax.random.PRNGKey(0)

    # --- Test 1: module-faithful small case (Linear(dim, dim), f32 MXU) ----
    B, N, D = 2, 8, 32
    k1, k2, k3, key = jax.random.split(key, 4)
    x = jax.random.normal(k1, (B, N, D), dtype=jnp.float32)
    gamma = jnp.ones((D,), dtype=jnp.float32)   # nn.LayerNorm default affine
    beta = jnp.zeros((D,), dtype=jnp.float32)
    w = jax.random.normal(k2, (D, D), dtype=jnp.float32) * 0.02  # torch (out,in)
    b = jax.random.normal(k3, (D,), dtype=jnp.float32) * 0.02
    w_t = jnp.asarray(w.T)                      # transpose ONCE at prep time
    out = jax.block_until_ready(prenorm_linear_forward(x, gamma, beta, w_t, b))
    ref = _reference(x, gamma, beta, w_t, b)
    assert out.shape == (B, N, D)
    assert jnp.allclose(out, ref, atol=1e-4, rtol=1e-4), "test1 mismatch"

    # --- Test 2: bf16-weight MXU path + column tiling (LN cached over j) ---
    B, N, D, DO = 2, 64, 256, 256
    k1, k2, k3, k4, k5, key = jax.random.split(key, 6)
    x = jax.random.normal(k1, (B, N, D), dtype=jnp.float32)
    gamma = 1.0 + 0.1 * jax.random.normal(k2, (D,), dtype=jnp.float32)
    beta = 0.1 * jax.random.normal(k3, (D,), dtype=jnp.float32)
    w = jax.random.normal(k4, (DO, D), dtype=jnp.float32) * 0.02
    b = jax.random.normal(k5, (DO,), dtype=jnp.float32) * 0.02
    w_t_bf16 = jnp.asarray(w.T, dtype=jnp.bfloat16)  # prep-time cast for MXU
    out = jax.block_until_ready(
        prenorm_linear_forward(x, gamma, beta, w_t_bf16, b, force_tile_n=128))
    ref = _reference(x, gamma, beta, w_t_bf16.astype(jnp.float32), b)
    assert out.shape == (B, N, DO)
    assert jnp.allclose(out, ref, atol=2e-2, rtol=2e-2), "test2 mismatch"

    # --- Test 3: j-outer grid order (x re-streamed, W read once) ----------
    B, N, D, DO = 2, 32, 256, 256
    k1, k2, k3, key = jax.random.split(key, 4)
    x = jax.random.normal(k1, (B, N, D), dtype=jnp.float32)
    gamma = jnp.ones((D,), dtype=jnp.float32)
    beta = jnp.zeros((D,), dtype=jnp.float32)
    w = jax.random.normal(k2, (DO, D), dtype=jnp.float32) * 0.02
    b = jax.random.normal(k3, (DO,), dtype=jnp.float32) * 0.02
    w_t = jnp.asarray(w.T)
    out = jax.block_until_ready(
        prenorm_linear_forward(x, gamma, beta, w_t, b,
                               row_tile=8, force_tile_n=128))
    ref = _reference(x, gamma, beta, w_t, b)
    assert out.shape == (B, N, DO)
    assert jnp.allclose(out, ref, atol=1e-4, rtol=1e-4), "test3 mismatch"

    print("KERNEL_OK")
</pallas_src>

<mosaic_0001>
module attributes {stable_mosaic.version = 11 : i64} {
  func.func @kernel(%arg0: i32, %arg1: i32, %arg2: memref<16x128xf32, #tpu.memory_space<vmem>>, %arg3: memref<1x128xf32, #tpu.memory_space<vmem>>, %arg4: memref<1x128xf32, #tpu.memory_space<vmem>>, %arg5: memref<128x128xf32, #tpu.memory_space<vmem>>, %arg6: memref<1x128xf32, #tpu.memory_space<vmem>>, %arg7: memref<16x128xf32, #tpu.memory_space<vmem>>) attributes {dimension_semantics = [#tpu.dimension_semantics<parallel>, #tpu.dimension_semantics<parallel>], iteration_bounds = array<i64: 1, 1>, scalar_prefetch = 0 : i64, scratch_operands = 0 : i64, tpu.core_type = #tpu.core_type<tc>, window_params = [{transform_indices = @transform_0, window_bounds = array<i64: 16, 128>}, {pipeline_mode = #tpu.pipeline_mode<synchronous>, transform_indices = @transform_1, window_bounds = array<i64: 1, 128>}, {pipeline_mode = #tpu.pipeline_mode<synchronous>, transform_indices = @transform_2, window_bounds = array<i64: 1, 128>}, {transform_indices = @transform_3, window_bounds = array<i64: 128, 128>}, {transform_indices = @transform_4, window_bounds = array<i64: 1, 128>}, {transform_indices = @transform_5, window_bounds = array<i64: 16, 128>}]} {
    %c0 = arith.constant 0 : index
    %c0_0 = arith.constant 0 : index
    %0 = vector.load %arg2[%c0, %c0_0] : memref<16x128xf32, #tpu.memory_space<vmem>>, vector<16x128xf32>
    %1 = tpu.iota {dimensions = array<i32: 1>} : vector<16x128xi32>
    %c32_i32 = arith.constant 32 : i32
    %2 = vector.broadcast %c32_i32 : i32 to vector<16x128xi32>
    %3 = arith.cmpi slt, %1, %2 : vector<16x128xi32>
    %cst = arith.constant 0.000000e+00 : f32
    %4 = vector.broadcast %cst : f32 to vector<16x128xf32>
    %5 = arith.select %3, %0, %4 : vector<16x128xi1>, vector<16x128xf32>
    %cst_1 = arith.constant dense<0.000000e+00> : vector<16xf32>
    %6 = vector.multi_reduction <add>, %5, %cst_1 [1] : vector<16x128xf32> to vector<16xf32>
    %7 = vector.shape_cast %6 : vector<16xf32> to vector<16x1xf32>
    %cst_2 = arith.constant 3.125000e-02 : f32
    %8 = vector.broadcast %cst_2 : f32 to vector<16x1xf32>
    %9 = arith.mulf %7, %8 : vector<16x1xf32>
    %10 = vector.broadcast %9 : vector<16x1xf32> to vector<16x128xf32>
    %11 = arith.subf %5, %10 : vector<16x128xf32>
    %cst_3 = arith.constant 0.000000e+00 : f32
    %12 = vector.broadcast %cst_3 : f32 to vector<16x128xf32>
    %13 = arith.select %3, %11, %12 : vector<16x128xi1>, vector<16x128xf32>
    %14 = arith.mulf %13, %13 : vector<16x128xf32>
    %cst_4 = arith.constant dense<0.000000e+00> : vector<16xf32>
    %15 = vector.multi_reduction <add>, %14, %cst_4 [1] : vector<16x128xf32> to vector<16xf32>
    %16 = vector.shape_cast %15 : vector<16xf32> to vector<16x1xf32>
    %cst_5 = arith.constant 3.125000e-02 : f32
    %17 = vector.broadcast %cst_5 : f32 to vector<16x1xf32>
    %18 = arith.mulf %16, %17 : vector<16x1xf32>
    %cst_6 = arith.constant 9.99999974E-6 : f32
    %19 = vector.broadcast %cst_6 : f32 to vector<16x1xf32>
    %20 = arith.addf %18, %19 : vector<16x1xf32>
    %21 = math.rsqrt %20 : vector<16x1xf32>
    %22 = vector.broadcast %21 : vector<16x1xf32> to vector<16x128xf32>
    %23 = arith.mulf %13, %22 : vector<16x128xf32>
    %c0_7 = arith.constant 0 : index
    %c0_8 = arith.constant 0 : index
    %24 = vector.load %arg3[%c0_7, %c0_8] : memref<1x128xf32, #tpu.memory_space<vmem>>, vector<1x128xf32>
    %25 = vector.broadcast %24 : vector<1x128xf32> to vector<16x128xf32>
    %26 = arith.mulf %23, %25 : vector<16x128xf32>
    %c0_9 = arith.constant 0 : index
    %c0_10 = arith.constant 0 : index
    %27 = vector.load %arg4[%c0_9, %c0_10] : memref<1x128xf32, #tpu.memory_space<vmem>>, vector<1x128xf32>
    %28 = vector.broadcast %27 : vector<1x128xf32> to vector<16x128xf32>
    %29 = arith.addf %26, %28 : vector<16x128xf32>
    %c0_11 = arith.constant 0 : index
    %c0_12 = arith.constant 0 : index
    %30 = vector.load %arg5[%c0_11, %c0_12] : memref<128x128xf32, #tpu.memory_space<vmem>>, vector<128x128xf32>
    %cst_13 = arith.constant dense<0.000000e+00> : vector<16x128xf32>
    %31 = tpu.matmul %29, %30, %cst_13 {dimension_numbers = #tpu.dot_dimension_numbers<[1], [0], [0], [1], [0, 0, 1, 1], [], []>} : vector<16x128xf32>, vector<128x128xf32>, vector<16x128xf32> -> vector<16x128xf32>
    %c0_14 = arith.constant 0 : index
    %c0_15 = arith.constant 0 : index
    %32 = vector.load %arg6[%c0_14, %c0_15] : memref<1x128xf32, #tpu.memory_space<vmem>>, vector<1x128xf32>
    %33 = vector.broadcast %32 : vector<1x128xf32> to vector<16x128xf32>
    %34 = arith.addf %31, %33 : vector<16x128xf32>
    %c0_16 = arith.constant 0 : index
    %c0_17 = arith.constant 0 : index
    %35 = vector.load %arg7[%c0_16, %c0_17] : memref<16x128xf32, #tpu.memory_space<vmem>>, vector<16x128xf32>
    tpu.vector_store %arg7[%c0_16, %c0_17], %34 {strides = array<i32>} : memref<16x128xf32, #tpu.memory_space<vmem>>, vector<16x128xf32>,
    return
  }
  func.func @transform_0(%arg0: i32, %arg1: i32) -> (i32, i32) {
    %c0_i32 = arith.constant 0 : i32
    %c0_i32_0 = arith.constant 0 : i32
    return %arg0, %c0_i32 : i32, i32
  }
  func.func @transform_1(%arg0: i32, %arg1: i32) -> (i32, i32) {
    %c0_i32 = arith.constant 0 : i32
    %c0_i32_0 = arith.constant 0 : i32
    %c0_i32_1 = arith.constant 0 : i32
    return %c0_i32, %c0_i32_0 : i32, i32
  }
  func.func @transform_2(%arg0: i32, %arg1: i32) -> (i32, i32) {
    %c0_i32 = arith.constant 0 : i32
    %c0_i32_0 = arith.constant 0 : i32
    %c0_i32_1 = arith.constant 0 : i32
    return %c0_i32, %c0_i32_0 : i32, i32
  }
  func.func @transform_3(%arg0: i32, %arg1: i32) -> (i32, i32) {
    %c0_i32 = arith.constant 0 : i32
    %c0_i32_0 = arith.constant 0 : i32
    return %c0_i32, %arg1 : i32, i32
  }
  func.func @transform_4(%arg0: i32, %arg1: i32) -> (i32, i32) {
    %c0_i32 = arith.constant 0 : i32
    %c0_i32_0 = arith.constant 0 : i32
    return %c0_i32, %arg1 : i32, i32
  }
  func.func @transform_5(%arg0: i32, %arg1: i32) -> (i32, i32) {
    %c0_i32 = arith.constant 0 : i32
    return %arg0, %arg1 : i32, i32
  }
}

</mosaic_0001>

<bundles_post_ra>
// kernel: tpu_custom_call.1
= control target key start
LH: loop header
LB: loop body
LE: loop exit
PB: predicated region body
PF: predicated region fallthrough
CT: control target
= control target key end

     0   :  { %10 = vsyncpa [#allocation3], 0  ;;  %s413_s0 = inlined_call_operand.hbm [shape: f32[16,128], index: 0, kind: input, shape index: {}]   ;;  %s414_s1 = inlined_call_operand.vmem [shape: f32[1,128], index: 1, kind: input, shape index: {}]   ;;  %s415_s2 = inlined_call_operand.vmem [shape: f32[1,128], index: 2, kind: input, shape index: {}]   ;;  %s416_s3 = inlined_call_operand.hbm [shape: f32[128,128], index: 3, kind: input, shape index: {}]   ;;  %s417_s4 = inlined_call_operand.vmem [shape: f32[1,128], index: 4, kind: input, shape index: {}]   ;;  %s418_s5 = inlined_call_operand.hbm [shape: f32[16,128], index: 5, kind: output, shape index: {}]  }
   0x1   :  { %11 = vsyncpa [#allocation6], 0 }
   0x2   :  { %12 = vsyncpa [#allocation4], 0  ;;  %s347_s18 = smov [#allocation2]  }
   0x3   :  { %s18_s19 = sshll.u32 %s347_s18, 4  ;;  %s19_s19 = int_to_ptr.vmem [resolvable:$true] %s18_s19 }
   0x4   :  { %s289_s20 = scalar_lea.vmem %s19_s19, 256  ;;  %p294_p1 = scmp.lt.s32.totalorder %s19_s19, %s19_s19 }
   0x5   :  { %p290_p0 = scmp.ne.s32.totalorder %s19_s19, %s289_s20  ;;  %p295_p2 = scmp.lt.s32.totalorder %s289_s20, %s289_s20 }
   0x7   :  { %p296_p3 = por %p295_p2, %p294_p1 }
   0x9   :  { %p297_p4 = pnand %p296_p3, %p290_p0 }
   0xb   :  { %300 = shalt.err (!%p297_p4)
}
   0xc   :  { %s348_s21 = smov 128   ;;  %s349_s22 = smov 8  }
   0xd   :  { %24 = dma.hbm_to_vmem [thread:$0]  %s413_s0, 256, %s19_s19, [#allocation3], %s348_s21, %s348_s21, %s349_s22  }
   0xe   :  { %s350_s25 = smov [#allocation5]  }
   0xf   :  { %s34_s26 = sshll.u32 %s350_s25, 4  ;;  %s35_s26 = int_to_ptr.vmem [resolvable:$true] %s34_s26 }
  0x10   :  { %s309_s27 = scalar_lea.vmem %s35_s26, 2048  ;;  %p314_p6 = scmp.lt.s32.totalorder %s35_s26, %s35_s26 }
  0x11   :  { %p310_p5 = scmp.ne.s32.totalorder %s35_s26, %s309_s27  ;;  %p315_p7 = scmp.lt.s32.totalorder %s309_s27, %s309_s27 }
  0x13   :  { %p316_p8 = por %p315_p7, %p314_p6 }
  0x15   :  { %p317_p9 = pnand %p316_p8, %p310_p5 }
  0x17   :  { %320 = shalt.err (!%p317_p9)
}
  0x18   :  { %40 = dma.hbm_to_vmem [thread:$0]  %s416_s3, 2048, %s35_s26, [#allocation6], %s348_s21, %s348_s21, %s349_s22  }
  0x19   :  { %341 = dma.done.wait [#allocation3], 256  }
  0x1a   :  { %342 = vsyncadd [#allocation3], 4294967040 }
  0x1b   :  { %343 = dma.done.wait [#allocation6], 2048  }
  0x1c   :  { %344 = vsyncadd [#allocation6], 4294965248  ;;  %v51_v0 = vlaneseq  ;;  %v49_v2 = vld [vmem:[#allocation2] sm:$0xff]  ;;  %v50_v3 = vld [vmem:[#allocation2 + $0x8] sm:$0xff]  ;;  %s351_s9 = smov [#allocation7]  }
  0x1d   :  { %v113_v6 = vld [vmem:[#allocation5 + $0x78] sm:$0xff]  ;;  %v112_v7 = vld [vmem:[#allocation5 + $0x70] sm:$0xff]  ;;  %v111_v18 = vld [vmem:[#allocation5 + $0x68] sm:$0xff] }
  0x1e   :  { %v52_v1 = vand.u32 127, %v51_v0  ;;  %237 = vmatprep.subr.mxu0 %v113_v6  ;;  %v110_v19 = vld [vmem:[#allocation5 + $0x60] sm:$0xff]  ;;  %v109_v20 = vld [vmem:[#allocation5 + $0x58] sm:$0xff]  ;;  %v108_v21 = vld [vmem:[#allocation5 + $0x50] sm:$0xff] }
  0x1f   :  { %238 = vmatpush3.msra.mxu0 %v113_v6  ;;  %v107_v22 = vld [vmem:[#allocation5 + $0x48] sm:$0xff]  ;;  %v106_v23 = vld [vmem:[#allocation5 + $0x40] sm:$0xff]  ;;  %v105_v24 = vld [vmem:[#allocation5 + $0x38] sm:$0xff] }
  0x20   :  { %vm53_vm0 = vcmp.lt.s32.totalorder %v52_v1, 32  ;;  %239 = vmatprep.subr.mxu0 %v112_v7  ;;  %v104_v25 = vld [vmem:[#allocation5 + $0x30] sm:$0xff]  ;;  %v103_v26 = vld [vmem:[#allocation5 + $0x28] sm:$0xff]  ;;  %v102_v27 = vld [vmem:[#allocation5 + $0x20] sm:$0xff] }
  0x21   :  { %v54_v4 = vsel %vm53_vm0, %v49_v2, 0.0  ;;  %v55_v5 = vsel %vm53_vm0, %v50_v3, 0.0  ;;  %240 = vmatpush3.msra.mxu0 %v112_v7  ;;  %v101_v28 = vld [vmem:[#allocation5 + $0x18] sm:$0xff]  ;;  %v100_v29 = vld [vmem:[#allocation5 + $0x10] sm:$0xff]  ;;  %v99_v30 = vld [vmem:[#allocation5 + $0x8] sm:$0xff] }
  0x22   :  { %56 = vadd.xlane.f32.xlu0 %v54_v4  ;;  %241 = vmatprep.subr.mxu0 %v111_v18  ;;  %v98_v31 = vld [vmem:[#allocation5] sm:$0xff]  ;;  %v216_v39 = vld [vmem:[%s414_s1] ss:$0 sm:$0xff]  ;;  %s203_s1 = sshll.u32 %s351_s9, 4  ;;  %s204_s1 = int_to_ptr.vmem [resolvable:$true] %s203_s1 }
  0x23   :  { %242 = vmatpush3.msra.mxu0 %v111_v18  ;;  %v217_v41 = vld [vmem:[%s415_s2] ss:$0 sm:$0xff]  ;;  %s321_s2 = scalar_lea.vmem %s204_s1, 256  ;;  %p326_p11 = scmp.lt.s32.totalorder %s204_s1, %s204_s1 }
  0x24   :  { %243 = vmatprep.subr.mxu0 %v110_v19  ;;  %v218_v48 = vld [vmem:[%s417_s4] ss:$0 sm:$0xff]  ;;  %p322_p10 = scmp.ne.s32.totalorder %s204_s1, %s321_s2  ;;  %p327_p12 = scmp.lt.s32.totalorder %s321_s2, %s321_s2 }
  0x25   :  { %244 = vmatpush3.msra.mxu0 %v110_v19 }
  0x26   :  { %58 = vadd.xlane.f32.xlu0 %v55_v5  ;;  %245 = vmatprep.subr.mxu0 %v109_v20  ;;  %p328_p13 = por %p327_p12, %p326_p11 }
  0x27   :  { %246 = vmatpush3.msra.mxu0 %v109_v20 }
  0x28   :  { %247 = vmatprep.subr.mxu0 %v108_v21  ;;  %p329_p0 = pnand %p328_p13, %p322_p10 }
  0x29   :  { %248 = vmatpush3.msra.mxu0 %v108_v21 }
  0x2a   :  { %249 = vmatprep.subr.mxu0 %v107_v22 }
  0x2b   :  { %250 = vmatpush3.msra.mxu0 %v107_v22 }
  0x2c   :  { %251 = vmatprep.subr.mxu0 %v106_v23 }
  0x2d   :  { %252 = vmatpush3.msra.mxu0 %v106_v23 }
  0x2e   :  { %253 = vmatprep.subr.mxu0 %v105_v24 }
  0x2f   :  { %254 = vmatpush3.msra.mxu0 %v105_v24 }
  0x30   :  { %255 = vmatprep.subr.mxu0 %v104_v25 }
  0x31   :  { %256 = vmatpush3.msra.mxu0 %v104_v25 }
  0x32   :  { %257 = vmatprep.subr.mxu0 %v103_v26 }
  0x33   :  { %258 = vmatpush3.msra.mxu0 %v103_v26 }
  0x34   :  { %259 = vmatprep.subr.mxu0 %v102_v27 }
  0x35   :  { %260 = vmatpush3.msra.mxu0 %v102_v27 }
  0x36   :  { %261 = vmatprep.subr.mxu0 %v101_v28 }
  0x37   :  { %262 = vmatpush3.msra.mxu0 %v101_v28 }
  0x38   :  { %263 = vmatprep.subr.mxu0 %v100_v29 }
  0x39   :  { %264 = vmatpush3.msra.mxu0 %v100_v29 }
  0x3a   :  { %265 = vmatprep.subr.mxu0 %v99_v30 }
  0x3b   :  { %266 = vmatpush3.msra.mxu0 %v99_v30 }
  0x3c   :  { %267 = vmatprep.subr.mxu0 %v98_v31 }
  0x3d   :  { %268 = vmatpush3.msra.mxu0 %v98_v31 }
  0xab   :  { %v57_v8 = vpop.xlane.xlu0 %56 }
  0xac   :  { %v60_v9 = vmul.f32 0.03125, %v57_v8 }
  0xae   :  { %v62_v10 = vsub.f32 %v54_v4, %v60_v9 }
  0xaf   :  { %v59_v11 = vpop.xlane.xlu0 %58 }
  0xb0   :  { %v61_v12 = vmul.f32 0.03125, %v59_v11  ;;  %v64_v13 = vsel %vm53_vm0, %v62_v10, 0.0 }
  0xb1   :  { %v66_v14 = vmul.f32 %v64_v13, %v64_v13 }
  0xb2   :  { %v63_v15 = vsub.f32 %v55_v5, %v61_v12 }
  0xb3   :  { %68 = vadd.xlane.f32.xlu1 %v66_v14 }
  0xb4   :  { %v65_v16 = vsel %vm53_vm0, %v63_v15, 0.0 }
  0xb5   :  { %v67_v17 = vmul.f32 %v65_v16, %v65_v16 }
  0xb7   :  { %70 = vadd.xlane.f32.xlu1 %v67_v17 }
 0x13c   :  { %v69_v32 = vpop.xlane.xlu1 %68 }
 0x13d   :  { %v72_v33 = vmul.f32 0.03125, %v69_v32 }
 0x13f   :  { %v74_v34 = vadd.f32 1e-05, %v72_v33 }
 0x140   :  { %v71_v35 = vpop.xlane.xlu1 %70 }
 0x141   :  { %277 = vrsqrt.f32 %v74_v34  ;;  %v73_v36 = vmul.f32 0.03125, %v71_v35 }
 0x143   :  { %v75_v37 = vadd.f32 1e-05, %v73_v36 }
 0x145   :  { %279 = vrsqrt.f32 %v75_v37 }
 0x14e   :  { %v278_v38 = vpop.eup %277 }
 0x14f   :  { %v78_v40 = vmul.f32 %v278_v38, %v64_v13 }
 0x151   :  { %v87_v42 = vmul.f32 %v216_v39, %v78_v40 }
 0x152   :  { %v280_v43 = vpop.eup %279 }
 0x153   :  { %v79_v44 = vmul.f32 %v280_v43, %v65_v16  ;;  %v96_v45 = vadd.f32 %v217_v41, %v87_v42 }
 0x155   :  { %v88_v46 = vmul.f32 %v216_v39, %v79_v44  ;;  %269 = vmatprep.mubr.f32.mxu0 %v96_v45 }
 0x157   :  { %v97_v47 = vadd.f32 %v217_v41, %v88_v46 }
 0x159   :  { %270 = vmatmul.mubr.f32.vlgmr.msra.gmra.mxu0 %v97_v47 }
 0x219   :  { %v271_v49 = vpop.f32.mrf.mxu0 }
 0x21a   :  { %v193_v50 = vadd.f32 %v271_v49, %v218_v48 }
 0x21b   :  { %v187_v51 = vpop.f32.mrf.mxu0 }
 0x21c   :  { %197 = vst [vmem:[#allocation7 + $0x8] sm:$0xff] %v193_v50  ;;  %v188_v52 = vadd.f32 %v218_v48, %v187_v51 }
 0x21e   :  { %196 = vst [vmem:[#allocation7] sm:$0xff] %v188_v52 }
 0x21f   :  { %332 = shalt.err (!%p329_p0)
}
 0x220   :  { %209 = dma.vmem_to_hbm [thread:$0]  %s204_s1, 256, %s418_s5, [#allocation4], %s348_s21, %s348_s21, %s349_s22  }
 0x221   :  { %345 = dma.done.wait [#allocation4], 256  }
 0x222   :  { %346 = vsyncadd [#allocation4], 4294967040 }
 0x223   :  { %213 = vsyncpa [#allocation3], 1 }
 0x224   :  { %214 = vsyncpa [#allocation6], 1 }
 0x225   :  { %215 = vsyncpa [#allocation4], 1 }

</bundles_post_ra>
